<compile_context>
chip_gen: v6e
topology: v6e:2x2x1
jax: 0.10.0
libtpu: 0.0.40
codegen_flags: <defaults>
</compile_context>

<pallas_src>
import functools

import jax
import jax.numpy as jnp
from jax import lax
from jax.experimental import pallas as pl
from jax.experimental.pallas import tpu as pltpu


def _silu(x):
    return x * jax.nn.sigmoid(x)


_TAPS = tuple((dh, dw) for dh in (-1, 0, 1) for dw in (-1, 0, 1))
_CENTER_TAP = 4  # (dh, dw) == (0, 0) -> no boundary mask needed


def _bottleneck_kernel(x_ref, w1_ref, b1_ref, w2_ref, b2_ref, m_ref, o_ref, *,
                       H, W, add, use_im2col, batch_tile):
    # x_ref  : (BT, C1, H*W)   current batch chunk, channels x flattened spatial
    # w1_ref : (Cm, C1)        1x1 conv weight
    # b1_ref : (Cm, 1)         f32
    # w2_ref : (9, C2, Cm)  [9-dot path]  or  (C2, 9*Cm)  [im2col path]
    # b2_ref : (C2, 1)         f32
    # m_ref  : (9, 1, H*W)     precomputed 0/1 halo masks, activation dtype
    # o_ref  : (BT, C2, H*W)
    HW = H * W
    C2 = b2_ref.shape[0]

    # Per-image unrolled loop: each image keeps its own lane-dense (C, HW) slab,
    # so rolls / masks / layout are identical to the per-image kernel, but the
    # grid-step and DMA overhead is amortized over `batch_tile` images.
    for b in range(batch_tile):
        x = x_ref[b]                  # (C1, HW), activation dtype (MXU operand)
        cdt = x.dtype

        # ---- cv1: 1x1 conv == channel matmul, bias + SiLU in f32 ----
        y = jnp.dot(w1_ref[...], x, preferred_element_type=jnp.float32)  # (Cm, HW)
        y = _silu(y + b1_ref[...])
        y = y.astype(cdt)             # stage at activation dtype for the cv2 matmul

        # ---- cv2: 3x3 conv (padding=1) via lane-rolled taps + halo masks ----
        tap_vals = []
        for t, (dh, dw) in enumerate(_TAPS):
            s = dh * W + dw           # flat source offset: patch[i] = y[i + s]
            p = y if s == 0 else pltpu.roll(y, (-s) % HW, axis=1)
            if t != _CENTER_TAP:
                p = p * m_ref[t]      # (1, HW) 0/1 mask, zeroes wrapped positions
            tap_vals.append(p)

        if use_im2col:
            # Cm >= sublane tile: one matmul with K = 9*Cm fills the MXU and
            # avoids the 9 separate pushes/pops and the per-tap accumulator.
            patch = jnp.concatenate(tap_vals, axis=0)                    # (9*Cm, HW)
            acc = jnp.dot(w2_ref[...], patch, preferred_element_type=jnp.float32)
        else:
            # Tiny Cm: nine small dots; functional f32 accumulator stays in vregs.
            acc = jnp.zeros((C2, HW), jnp.float32)
            for t in range(9):
                acc = acc + jnp.dot(w2_ref[t], tap_vals[t],
                                    preferred_element_type=jnp.float32)

        out = _silu(acc + b2_ref[...])                                    # (C2, HW) f32

        # ---- optional residual (shortcut and c1 == c2) ----
        if add:
            out = out + x.astype(jnp.float32)

        o_ref[b] = out.astype(o_ref.dtype)


def bottleneck_pallas(x_nchw, w1, b1, w2, b2, *, shortcut=True, batch_tile=None):
    """x_nchw: (N, C1, H, W). w1: (Cm, C1, 1, 1) OIHW. w2: (C2, Cm, 3, 3) OIHW.

    batch_tile: images folded into one grid step.  Default folds as many as fit
    a small VMEM budget (single step at tiny shapes).  On v7x pass N//2 to keep
    two balanced 'parallel' iterations for the dual TensorCores.
    """
    N, C1, H, W = x_nchw.shape
    Cm = w1.shape[0]
    C2 = w2.shape[0]
    HW = H * W
    add = bool(shortcut and C1 == C2)
    adt = x_nchw.dtype
    itemsize = jnp.dtype(adt).itemsize

    # ---- batch tiling: fold several images into one grid step ----
    if batch_tile is None:
        # Keep per-step activation blocks (in + out, double-buffered) under ~8 MiB.
        per_img = 2 * (C1 + C2) * HW * itemsize
        batch_tile = max(1, min(N, (8 << 20) // max(per_img, 1)))
        while N % batch_tile:
            batch_tile -= 1
    assert N % batch_tile == 0, "batch_tile must divide N"
    G = N // batch_tile

    # im2col only pays once Cm reaches the sublane tile (8 f32 / 16 bf16).
    use_im2col = Cm >= (16 if itemsize < 4 else 8)

    # Free (metadata-only) reshape: NCHW -> (N, C, H*W).  No transposes.
    x2 = x_nchw.reshape(N, C1, HW)

    # Tiny weight re-layouts (done once, outside the hot loop).
    w1_2d = w1.reshape(Cm, C1).astype(adt)                                  # (Cm, C1)
    b1_2d = b1.reshape(Cm, 1).astype(jnp.float32)
    w2_t = jnp.transpose(w2, (2, 3, 0, 1)).reshape(9, C2, Cm).astype(adt)   # tap-major
    if use_im2col:
        w2_arg = jnp.transpose(w2_t, (1, 0, 2)).reshape(C2, 9 * Cm)         # (C2, 9*Cm)
        w2_spec = pl.BlockSpec((C2, 9 * Cm), lambda g: (0, 0))
    else:
        w2_arg = w2_t
        w2_spec = pl.BlockSpec((9, C2, Cm), lambda g: (0, 0, 0))
    b2_2d = b2.reshape(C2, 1).astype(jnp.float32)

    # ---- grid-invariant 3x3 halo masks, hoisted out of the kernel ----
    pos = jnp.arange(HW, dtype=jnp.int32)
    hh = pos // W
    ww = pos % W
    masks = []
    for dh, dw in _TAPS:
        ok = jnp.ones((HW,), jnp.bool_)
        if dh == -1:
            ok = ok & (hh >= 1)
        if dh == 1:
            ok = ok & (hh <= H - 2)
        if dw == -1:
            ok = ok & (ww >= 1)
        if dw == 1:
            ok = ok & (ww <= W - 2)
        masks.append(ok)
    mask_arr = jnp.stack(masks).astype(adt).reshape(9, 1, HW)

    kernel = functools.partial(_bottleneck_kernel, H=H, W=W, add=add,
                               use_im2col=use_im2col, batch_tile=batch_tile)

    # Advisory cost estimate so XLA schedules neighbours around this small call.
    flops = 2 * N * HW * (Cm * C1 + 9 * C2 * Cm) + N * HW * (4 * Cm + 5 * C2)
    transcendentals = N * HW * (Cm + C2)
    bytes_accessed = (N * (C1 + C2) * HW * itemsize
                      + (w1_2d.size + w2_t.size + mask_arr.size) * itemsize
                      + (Cm + C2) * 4)

    out2 = pl.pallas_call(
        kernel,
        out_shape=jax.ShapeDtypeStruct((N, C2, HW), adt),
        grid=(G,),
        in_specs=[
            pl.BlockSpec((batch_tile, C1, HW), lambda g: (g, 0, 0)),
            pl.BlockSpec((Cm, C1), lambda g: (0, 0)),
            pl.BlockSpec((Cm, 1), lambda g: (0, 0)),
            w2_spec,
            pl.BlockSpec((C2, 1), lambda g: (0, 0)),
            pl.BlockSpec((9, 1, HW), lambda g: (0, 0, 0)),
        ],
        out_specs=pl.BlockSpec((batch_tile, C2, HW), lambda g: (g, 0, 0)),
        compiler_params=pltpu.CompilerParams(dimension_semantics=("parallel",)),
        cost_estimate=pl.CostEstimate(flops=flops,
                                      transcendentals=transcendentals,
                                      bytes_accessed=bytes_accessed),
    )(x2, w1_2d, b1_2d, w2_arg, b2_2d, mask_arr)

    return out2.reshape(N, C2, H, W)        # free reshape back to NCHW


def bottleneck_ref(x_nchw, w1, b1, w2, b2, *, shortcut=True):
    """Plain-JAX reference (matches the torch module: conv+bias+SiLU x2, +x)."""
    dn = ("NCHW", "OIHW", "NCHW")
    y = lax.conv_general_dilated(x_nchw, w1, (1, 1), "VALID", dimension_numbers=dn)
    y = _silu(y + b1[None, :, None, None])
    z = lax.conv_general_dilated(y, w2, (1, 1), ((1, 1), (1, 1)), dimension_numbers=dn)
    z = _silu(z + b2[None, :, None, None])
    add = shortcut and x_nchw.shape[1] == z.shape[1]
    return x_nchw + z if add else z


if __name__ == "__main__":
    def run_case(key, N, C1, C2, H, W, e=0.5, shortcut=True):
        Cm = int(C2 * e)
        k0, k1, k2, k3, k4 = jax.random.split(key, 5)
        x = jax.random.normal(k0, (N, C1, H, W), jnp.float32)
        w1 = jax.random.normal(k1, (Cm, C1, 1, 1), jnp.float32) * 0.3
        b1 = jax.random.normal(k2, (Cm,), jnp.float32) * 0.1
        w2 = jax.random.normal(k3, (C2, Cm, 3, 3), jnp.float32) * 0.3
        b2 = jax.random.normal(k4, (C2,), jnp.float32) * 0.1
        out = jax.block_until_ready(
            bottleneck_pallas(x, w1, b1, w2, b2, shortcut=shortcut))
        ref = jax.block_until_ready(
            bottleneck_ref(x, w1, b1, w2, b2, shortcut=shortcut))
        assert out.shape == ref.shape
        assert jnp.allclose(out, ref, atol=1e-4, rtol=1e-4), "mismatch vs reference"

    # Bottleneck(c1=4, c2=4, shortcut=True, g=1, e=0.5) -> c_ = 2  (9-dot path,
    # batch folded into a single grid step).
    run_case(jax.random.PRNGKey(0), N=2, C1=4, C2=4, H=16, W=16)
    # Larger channel count -> c_ = 8: exercises the single im2col matmul path.
    run_case(jax.random.PRNGKey(1), N=2, C1=16, C2=16, H=16, W=16)

    print("KERNEL_OK")
</pallas_src>

<mosaic_0001>
module attributes {stable_mosaic.version = 11 : i64} {
  func.func @_bottleneck_kernel(%arg0: i32, %arg1: memref<2x4x256xf32, #tpu.memory_space<vmem>>, %arg2: memref<2x4xf32, #tpu.memory_space<vmem>>, %arg3: memref<2x1xf32, #tpu.memory_space<vmem>>, %arg4: memref<9x4x2xf32, #tpu.memory_space<vmem>>, %arg5: memref<4x1xf32, #tpu.memory_space<vmem>>, %arg6: memref<9x1x256xf32, #tpu.memory_space<vmem>>, %arg7: memref<2x4x256xf32, #tpu.memory_space<vmem>>) attributes {dimension_semantics = [#tpu.dimension_semantics<parallel>], iteration_bounds = array<i64: 1>, scalar_prefetch = 0 : i64, scratch_operands = 0 : i64, tpu.core_type = #tpu.core_type<tc>, window_params = [{transform_indices = @transform_0, window_bounds = array<i64: 2, 4, 256>}, {pipeline_mode = #tpu.pipeline_mode<synchronous>, transform_indices = @transform_1, window_bounds = array<i64: 2, 4>}, {pipeline_mode = #tpu.pipeline_mode<synchronous>, transform_indices = @transform_2, window_bounds = array<i64: 2, 1>}, {pipeline_mode = #tpu.pipeline_mode<synchronous>, transform_indices = @transform_3, window_bounds = array<i64: 9, 4, 2>}, {pipeline_mode = #tpu.pipeline_mode<synchronous>, transform_indices = @transform_4, window_bounds = array<i64: 4, 1>}, {pipeline_mode = #tpu.pipeline_mode<synchronous>, transform_indices = @transform_5, window_bounds = array<i64: 9, 1, 256>}, {transform_indices = @transform_6, window_bounds = array<i64: 2, 4, 256>}]} {
    %c0 = arith.constant 0 : index
    %c0_0 = arith.constant 0 : index
    %c0_1 = arith.constant 0 : index
    %0 = vector.load %arg1[%c0, %c0_0, %c0_1] : memref<2x4x256xf32, #tpu.memory_space<vmem>>, vector<1x4x256xf32>
    %1 = vector.shape_cast %0 : vector<1x4x256xf32> to vector<4x256xf32>
    %c0_2 = arith.constant 0 : index
    %c0_3 = arith.constant 0 : index
    %2 = vector.load %arg2[%c0_2, %c0_3] : memref<2x4xf32, #tpu.memory_space<vmem>>, vector<2x4xf32>
    %cst = arith.constant dense<0.000000e+00> : vector<2x256xf32>
    %3 = tpu.matmul %2, %1, %cst {dimension_numbers = #tpu.dot_dimension_numbers<[1], [0], [0], [1], [0, 0, 1, 1], [], []>} : vector<2x4xf32>, vector<4x256xf32>, vector<2x256xf32> -> vector<2x256xf32>
    %c0_4 = arith.constant 0 : index
    %c0_5 = arith.constant 0 : index
    %4 = vector.load %arg3[%c0_4, %c0_5] : memref<2x1xf32, #tpu.memory_space<vmem>>, vector<2x1xf32>
    %5 = vector.broadcast %4 : vector<2x1xf32> to vector<2x256xf32>
    %6 = arith.addf %3, %5 : vector<2x256xf32>
    %7 = arith.negf %6 : vector<2x256xf32>
    %8 = math.exp %7 : vector<2x256xf32>
    %cst_6 = arith.constant 1.000000e+00 : f32
    %9 = vector.broadcast %cst_6 : f32 to vector<2x256xf32>
    %10 = arith.addf %9, %8 : vector<2x256xf32>
    %11 = arith.divf %9, %10 : vector<2x256xf32>
    %12 = arith.mulf %6, %11 : vector<2x256xf32>
    %c17_i32 = arith.constant 17 : i32
    %13 = tpu.dynamic_rotate %12 by %c17_i32 dim 1 : vector<2x256xf32>, i32 -> vector<2x256xf32>
    %c0_7 = arith.constant 0 : index
    %c0_8 = arith.constant 0 : index
    %c0_9 = arith.constant 0 : index
    %14 = vector.load %arg6[%c0_7, %c0_8, %c0_9] : memref<9x1x256xf32, #tpu.memory_space<vmem>>, vector<1x1x256xf32>
    %15 = vector.shape_cast %14 : vector<1x1x256xf32> to vector<1x256xf32>
    %16 = vector.broadcast %15 : vector<1x256xf32> to vector<2x256xf32>
    %17 = arith.mulf %13, %16 : vector<2x256xf32>
    %c16_i32 = arith.constant 16 : i32
    %18 = tpu.dynamic_rotate %12 by %c16_i32 dim 1 : vector<2x256xf32>, i32 -> vector<2x256xf32>
    %c1 = arith.constant 1 : index
    %c0_10 = arith.constant 0 : index
    %c0_11 = arith.constant 0 : index
    %19 = vector.load %arg6[%c1, %c0_10, %c0_11] : memref<9x1x256xf32, #tpu.memory_space<vmem>>, vector<1x1x256xf32>
    %20 = vector.shape_cast %19 : vector<1x1x256xf32> to vector<1x256xf32>
    %21 = vector.broadcast %20 : vector<1x256xf32> to vector<2x256xf32>
    %22 = arith.mulf %18, %21 : vector<2x256xf32>
    %c15_i32 = arith.constant 15 : i32
    %23 = tpu.dynamic_rotate %12 by %c15_i32 dim 1 : vector<2x256xf32>, i32 -> vector<2x256xf32>
    %c2 = arith.constant 2 : index
    %c0_12 = arith.constant 0 : index
    %c0_13 = arith.constant 0 : index
    %24 = vector.load %arg6[%c2, %c0_12, %c0_13] : memref<9x1x256xf32, #tpu.memory_space<vmem>>, vector<1x1x256xf32>
    %25 = vector.shape_cast %24 : vector<1x1x256xf32> to vector<1x256xf32>
    %26 = vector.broadcast %25 : vector<1x256xf32> to vector<2x256xf32>
    %27 = arith.mulf %23, %26 : vector<2x256xf32>
    %c1_i32 = arith.constant 1 : i32
    %28 = tpu.dynamic_rotate %12 by %c1_i32 dim 1 : vector<2x256xf32>, i32 -> vector<2x256xf32>
    %c3 = arith.constant 3 : index
    %c0_14 = arith.constant 0 : index
    %c0_15 = arith.constant 0 : index
    %29 = vector.load %arg6[%c3, %c0_14, %c0_15] : memref<9x1x256xf32, #tpu.memory_space<vmem>>, vector<1x1x256xf32>
    %30 = vector.shape_cast %29 : vector<1x1x256xf32> to vector<1x256xf32>
    %31 = vector.broadcast %30 : vector<1x256xf32> to vector<2x256xf32>
    %32 = arith.mulf %28, %31 : vector<2x256xf32>
    %c255_i32 = arith.constant 255 : i32
    %33 = tpu.dynamic_rotate %12 by %c255_i32 dim 1 : vector<2x256xf32>, i32 -> vector<2x256xf32>
    %c5 = arith.constant 5 : index
    %c0_16 = arith.constant 0 : index
    %c0_17 = arith.constant 0 : index
    %34 = vector.load %arg6[%c5, %c0_16, %c0_17] : memref<9x1x256xf32, #tpu.memory_space<vmem>>, vector<1x1x256xf32>
    %35 = vector.shape_cast %34 : vector<1x1x256xf32> to vector<1x256xf32>
    %36 = vector.broadcast %35 : vector<1x256xf32> to vector<2x256xf32>
    %37 = arith.mulf %33, %36 : vector<2x256xf32>
    %c241_i32 = arith.constant 241 : i32
    %38 = tpu.dynamic_rotate %12 by %c241_i32 dim 1 : vector<2x256xf32>, i32 -> vector<2x256xf32>
    %c6 = arith.constant 6 : index
    %c0_18 = arith.constant 0 : index
    %c0_19 = arith.constant 0 : index
    %39 = vector.load %arg6[%c6, %c0_18, %c0_19] : memref<9x1x256xf32, #tpu.memory_space<vmem>>, vector<1x1x256xf32>
    %40 = vector.shape_cast %39 : vector<1x1x256xf32> to vector<1x256xf32>
    %41 = vector.broadcast %40 : vector<1x256xf32> to vector<2x256xf32>
    %42 = arith.mulf %38, %41 : vector<2x256xf32>
    %c240_i32 = arith.constant 240 : i32
    %43 = tpu.dynamic_rotate %12 by %c240_i32 dim 1 : vector<2x256xf32>, i32 -> vector<2x256xf32>
    %c7 = arith.constant 7 : index
    %c0_20 = arith.constant 0 : index
    %c0_21 = arith.constant 0 : index
    %44 = vector.load %arg6[%c7, %c0_20, %c0_21] : memref<9x1x256xf32, #tpu.memory_space<vmem>>, vector<1x1x256xf32>
    %45 = vector.shape_cast %44 : vector<1x1x256xf32> to vector<1x256xf32>
    %46 = vector.broadcast %45 : vector<1x256xf32> to vector<2x256xf32>
    %47 = arith.mulf %43, %46 : vector<2x256xf32>
    %c239_i32 = arith.constant 239 : i32
    %48 = tpu.dynamic_rotate %12 by %c239_i32 dim 1 : vector<2x256xf32>, i32 -> vector<2x256xf32>
    %c8 = arith.constant 8 : index
    %c0_22 = arith.constant 0 : index
    %c0_23 = arith.constant 0 : index
    %49 = vector.load %arg6[%c8, %c0_22, %c0_23] : memref<9x1x256xf32, #tpu.memory_space<vmem>>, vector<1x1x256xf32>
    %50 = vector.shape_cast %49 : vector<1x1x256xf32> to vector<1x256xf32>
    %51 = vector.broadcast %50 : vector<1x256xf32> to vector<2x256xf32>
    %52 = arith.mulf %48, %51 : vector<2x256xf32>
    %cst_24 = arith.constant 0.000000e+00 : f32
    %53 = vector.broadcast %cst_24 : f32 to vector<4x256xf32>
    %c0_25 = arith.constant 0 : index
    %c0_26 = arith.constant 0 : index
    %c0_27 = arith.constant 0 : index
    %54 = vector.load %arg4[%c0_25, %c0_26, %c0_27] : memref<9x4x2xf32, #tpu.memory_space<vmem>>, vector<1x4x2xf32>
    %55 = vector.shape_cast %54 : vector<1x4x2xf32> to vector<4x2xf32>
    %cst_28 = arith.constant dense<0.000000e+00> : vector<4x256xf32>
    %56 = tpu.matmul %55, %17, %cst_28 {dimension_numbers = #tpu.dot_dimension_numbers<[1], [0], [0], [1], [0, 0, 1, 1], [], []>} : vector<4x2xf32>, vector<2x256xf32>, vector<4x256xf32> -> vector<4x256xf32>
    %57 = arith.addf %53, %56 : vector<4x256xf32>
    %c1_29 = arith.constant 1 : index
    %c0_30 = arith.constant 0 : index
    %c0_31 = arith.constant 0 : index
    %58 = vector.load %arg4[%c1_29, %c0_30, %c0_31] : memref<9x4x2xf32, #tpu.memory_space<vmem>>, vector<1x4x2xf32>
    %59 = vector.shape_cast %58 : vector<1x4x2xf32> to vector<4x2xf32>
    %cst_32 = arith.constant dense<0.000000e+00> : vector<4x256xf32>
    %60 = tpu.matmul %59, %22, %cst_32 {dimension_numbers = #tpu.dot_dimension_numbers<[1], [0], [0], [1], [0, 0, 1, 1], [], []>} : vector<4x2xf32>, vector<2x256xf32>, vector<4x256xf32> -> vector<4x256xf32>
    %61 = arith.addf %57, %60 : vector<4x256xf32>
    %c2_33 = arith.constant 2 : index
    %c0_34 = arith.constant 0 : index
    %c0_35 = arith.constant 0 : index
    %62 = vector.load %arg4[%c2_33, %c0_34, %c0_35] : memref<9x4x2xf32, #tpu.memory_space<vmem>>, vector<1x4x2xf32>
    %63 = vector.shape_cast %62 : vector<1x4x2xf32> to vector<4x2xf32>
    %cst_36 = arith.constant dense<0.000000e+00> : vector<4x256xf32>
    %64 = tpu.matmul %63, %27, %cst_36 {dimension_numbers = #tpu.dot_dimension_numbers<[1], [0], [0], [1], [0, 0, 1, 1], [], []>} : vector<4x2xf32>, vector<2x256xf32>, vector<4x256xf32> -> vector<4x256xf32>
    %65 = arith.addf %61, %64 : vector<4x256xf32>
    %c3_37 = arith.constant 3 : index
    %c0_38 = arith.constant 0 : index
    %c0_39 = arith.constant 0 : index
    %66 = vector.load %arg4[%c3_37, %c0_38, %c0_39] : memref<9x4x2xf32, #tpu.memory_space<vmem>>, vector<1x4x2xf32>
    %67 = vector.shape_cast %66 : vector<1x4x2xf32> to vector<4x2xf32>
    %cst_40 = arith.constant dense<0.000000e+00> : vector<4x256xf32>
    %68 = tpu.matmul %67, %32, %cst_40 {dimension_numbers = #tpu.dot_dimension_numbers<[1], [0], [0], [1], [0, 0, 1, 1], [], []>} : vector<4x2xf32>, vector<2x256xf32>, vector<4x256xf32> -> vector<4x256xf32>
    %69 = arith.addf %65, %68 : vector<4x256xf32>
    %c4 = arith.constant 4 : index
    %c0_41 = arith.constant 0 : index
    %c0_42 = arith.constant 0 : index
    %70 = vector.load %arg4[%c4, %c0_41, %c0_42] : memref<9x4x2xf32, #tpu.memory_space<vmem>>, vector<1x4x2xf32>
    %71 = vector.shape_cast %70 : vector<1x4x2xf32> to vector<4x2xf32>
    %cst_43 = arith.constant dense<0.000000e+00> : vector<4x256xf32>
    %72 = tpu.matmul %71, %12, %cst_43 {dimension_numbers = #tpu.dot_dimension_numbers<[1], [0], [0], [1], [0, 0, 1, 1], [], []>} : vector<4x2xf32>, vector<2x256xf32>, vector<4x256xf32> -> vector<4x256xf32>
    %73 = arith.addf %69, %72 : vector<4x256xf32>
    %c5_44 = arith.constant 5 : index
    %c0_45 = arith.constant 0 : index
    %c0_46 = arith.constant 0 : index
    %74 = vector.load %arg4[%c5_44, %c0_45, %c0_46] : memref<9x4x2xf32, #tpu.memory_space<vmem>>, vector<1x4x2xf32>
    %75 = vector.shape_cast %74 : vector<1x4x2xf32> to vector<4x2xf32>
    %cst_47 = arith.constant dense<0.000000e+00> : vector<4x256xf32>
    %76 = tpu.matmul %75, %37, %cst_47 {dimension_numbers = #tpu.dot_dimension_numbers<[1], [0], [0], [1], [0, 0, 1, 1], [], []>} : vector<4x2xf32>, vector<2x256xf32>, vector<4x256xf32> -> vector<4x256xf32>
    %77 = arith.addf %73, %76 : vector<4x256xf32>
    %c6_48 = arith.constant 6 : index
    %c0_49 = arith.constant 0 : index
    %c0_50 = arith.constant 0 : index
    %78 = vector.load %arg4[%c6_48, %c0_49, %c0_50] : memref<9x4x2xf32, #tpu.memory_space<vmem>>, vector<1x4x2xf32>
    %79 = vector.shape_cast %78 : vector<1x4x2xf32> to vector<4x2xf32>
    %cst_51 = arith.constant dense<0.000000e+00> : vector<4x256xf32>
    %80 = tpu.matmul %79, %42, %cst_51 {dimension_numbers = #tpu.dot_dimension_numbers<[1], [0], [0], [1], [0, 0, 1, 1], [], []>} : vector<4x2xf32>, vector<2x256xf32>, vector<4x256xf32> -> vector<4x256xf32>
    %81 = arith.addf %77, %80 : vector<4x256xf32>
    %c7_52 = arith.constant 7 : index
    %c0_53 = arith.constant 0 : index
    %c0_54 = arith.constant 0 : index
    %82 = vector.load %arg4[%c7_52, %c0_53, %c0_54] : memref<9x4x2xf32, #tpu.memory_space<vmem>>, vector<1x4x2xf32>
    %83 = vector.shape_cast %82 : vector<1x4x2xf32> to vector<4x2xf32>
    %cst_55 = arith.constant dense<0.000000e+00> : vector<4x256xf32>
    %84 = tpu.matmul %83, %47, %cst_55 {dimension_numbers = #tpu.dot_dimension_numbers<[1], [0], [0], [1], [0, 0, 1, 1], [], []>} : vector<4x2xf32>, vector<2x256xf32>, vector<4x256xf32> -> vector<4x256xf32>
    %85 = arith.addf %81, %84 : vector<4x256xf32>
    %c8_56 = arith.constant 8 : index
    %c0_57 = arith.constant 0 : index
    %c0_58 = arith.constant 0 : index
    %86 = vector.load %arg4[%c8_56, %c0_57, %c0_58] : memref<9x4x2xf32, #tpu.memory_space<vmem>>, vector<1x4x2xf32>
    %87 = vector.shape_cast %86 : vector<1x4x2xf32> to vector<4x2xf32>
    %cst_59 = arith.constant dense<0.000000e+00> : vector<4x256xf32>
    %88 = tpu.matmul %87, %52, %cst_59 {dimension_numbers = #tpu.dot_dimension_numbers<[1], [0], [0], [1], [0, 0, 1, 1], [], []>} : vector<4x2xf32>, vector<2x256xf32>, vector<4x256xf32> -> vector<4x256xf32>
    %89 = arith.addf %85, %88 : vector<4x256xf32>
    %c0_60 = arith.constant 0 : index
    %c0_61 = arith.constant 0 : index
    %90 = vector.load %arg5[%c0_60, %c0_61] : memref<4x1xf32, #tpu.memory_space<vmem>>, vector<4x1xf32>
    %91 = vector.broadcast %90 : vector<4x1xf32> to vector<4x256xf32>
    %92 = arith.addf %89, %91 : vector<4x256xf32>
    %93 = arith.negf %92 : vector<4x256xf32>
    %94 = math.exp %93 : vector<4x256xf32>
    %cst_62 = arith.constant 1.000000e+00 : f32
    %95 = vector.broadcast %cst_62 : f32 to vector<4x256xf32>
    %96 = arith.addf %95, %94 : vector<4x256xf32>
    %97 = arith.divf %95, %96 : vector<4x256xf32>
    %98 = arith.mulf %92, %97 : vector<4x256xf32>
    %99 = arith.addf %98, %1 : vector<4x256xf32>
    %c0_63 = arith.constant 0 : index
    %c0_64 = arith.constant 0 : index
    %c0_65 = arith.constant 0 : index
    %100 = vector.load %arg7[%c0_63, %c0_64, %c0_65] : memref<2x4x256xf32, #tpu.memory_space<vmem>>, vector<1x4x256xf32>
    %101 = vector.shape_cast %100 : vector<1x4x256xf32> to vector<4x256xf32>
    %102 = vector.shape_cast %99 : vector<4x256xf32> to vector<1x4x256xf32>
    tpu.vector_store %arg7[%c0_63, %c0_64, %c0_65], %102 {strides = array<i32>} : memref<2x4x256xf32, #tpu.memory_space<vmem>>, vector<1x4x256xf32>,
    %c1_66 = arith.constant 1 : index
    %c0_67 = arith.constant 0 : index
    %c0_68 = arith.constant 0 : index
    %103 = vector.load %arg1[%c1_66, %c0_67, %c0_68] : memref<2x4x256xf32, #tpu.memory_space<vmem>>, vector<1x4x256xf32>
    %104 = vector.shape_cast %103 : vector<1x4x256xf32> to vector<4x256xf32>
    %c0_69 = arith.constant 0 : index
    %c0_70 = arith.constant 0 : index
    %105 = vector.load %arg2[%c0_69, %c0_70] : memref<2x4xf32, #tpu.memory_space<vmem>>, vector<2x4xf32>
    %cst_71 = arith.constant dense<0.000000e+00> : vector<2x256xf32>
    %106 = tpu.matmul %105, %104, %cst_71 {dimension_numbers = #tpu.dot_dimension_numbers<[1], [0], [0], [1], [0, 0, 1, 1], [], []>} : vector<2x4xf32>, vector<4x256xf32>, vector<2x256xf32> -> vector<2x256xf32>
    %c0_72 = arith.constant 0 : index
    %c0_73 = arith.constant 0 : index
    %107 = vector.load %arg3[%c0_72, %c0_73] : memref<2x1xf32, #tpu.memory_space<vmem>>, vector<2x1xf32>
    %108 = vector.broadcast %107 : vector<2x1xf32> to vector<2x256xf32>
    %109 = arith.addf %106, %108 : vector<2x256xf32>
    %110 = arith.negf %109 : vector<2x256xf32>
    %111 = math.exp %110 : vector<2x256xf32>
    %cst_74 = arith.constant 1.000000e+00 : f32
    %112 = vector.broadcast %cst_74 : f32 to vector<2x256xf32>
    %113 = arith.addf %112, %111 : vector<2x256xf32>
    %114 = arith.divf %112, %113 : vector<2x256xf32>
    %115 = arith.mulf %109, %114 : vector<2x256xf32>
    %c17_i32_75 = arith.constant 17 : i32
    %116 = tpu.dynamic_rotate %115 by %c17_i32_75 dim 1 : vector<2x256xf32>, i32 -> vector<2x256xf32>
    %c0_76 = arith.constant 0 : index
    %c0_77 = arith.constant 0 : index
    %c0_78 = arith.constant 0 : index
    %117 = vector.load %arg6[%c0_76, %c0_77, %c0_78] : memref<9x1x256xf32, #tpu.memory_space<vmem>>, vector<1x1x256xf32>
    %118 = vector.shape_cast %117 : vector<1x1x256xf32> to vector<1x256xf32>
    %119 = vector.broadcast %118 : vector<1x256xf32> to vector<2x256xf32>
    %120 = arith.mulf %116, %119 : vector<2x256xf32>
    %c16_i32_79 = arith.constant 16 : i32
    %121 = tpu.dynamic_rotate %115 by %c16_i32_79 dim 1 : vector<2x256xf32>, i32 -> vector<2x256xf32>
    %c1_80 = arith.constant 1 : index
    %c0_81 = arith.constant 0 : index
    %c0_82 = arith.constant 0 : index
    %122 = vector.load %arg6[%c1_80, %c0_81, %c0_82] : memref<9x1x256xf32, #tpu.memory_space<vmem>>, vector<1x1x256xf32>
    %123 = vector.shape_cast %122 : vector<1x1x256xf32> to vector<1x256xf32>
    %124 = vector.broadcast %123 : vector<1x256xf32> to vector<2x256xf32>
    %125 = arith.mulf %121, %124 : vector<2x256xf32>
    %c15_i32_83 = arith.constant 15 : i32
    %126 = tpu.dynamic_rotate %115 by %c15_i32_83 dim 1 : vector<2x256xf32>, i32 -> vector<2x256xf32>
    %c2_84 = arith.constant 2 : index
    %c0_85 = arith.constant 0 : index
    %c0_86 = arith.constant 0 : index
    %127 = vector.load %arg6[%c2_84, %c0_85, %c0_86] : memref<9x1x256xf32, #tpu.memory_space<vmem>>, vector<1x1x256xf32>
    %128 = vector.shape_cast %127 : vector<1x1x256xf32> to vector<1x256xf32>
    %129 = vector.broadcast %128 : vector<1x256xf32> to vector<2x256xf32>
    %130 = arith.mulf %126, %129 : vector<2x256xf32>
    %c1_i32_87 = arith.constant 1 : i32
    %131 = tpu.dynamic_rotate %115 by %c1_i32_87 dim 1 : vector<2x256xf32>, i32 -> vector<2x256xf32>
    %c3_88 = arith.constant 3 : index
    %c0_89 = arith.constant 0 : index
    %c0_90 = arith.constant 0 : index
    %132 = vector.load %arg6[%c3_88, %c0_89, %c0_90] : memref<9x1x256xf32, #tpu.memory_space<vmem>>, vector<1x1x256xf32>
    %133 = vector.shape_cast %132 : vector<1x1x256xf32> to vector<1x256xf32>
    %134 = vector.broadcast %133 : vector<1x256xf32> to vector<2x256xf32>
    %135 = arith.mulf %131, %134 : vector<2x256xf32>
    %c255_i32_91 = arith.constant 255 : i32
    %136 = tpu.dynamic_rotate %115 by %c255_i32_91 dim 1 : vector<2x256xf32>, i32 -> vector<2x256xf32>
    %c5_92 = arith.constant 5 : index
    %c0_93 = arith.constant 0 : index
    %c0_94 = arith.constant 0 : index
    %137 = vector.load %arg6[%c5_92, %c0_93, %c0_94] : memref<9x1x256xf32, #tpu.memory_space<vmem>>, vector<1x1x256xf32>
    %138 = vector.shape_cast %137 : vector<1x1x256xf32> to vector<1x256xf32>
    %139 = vector.broadcast %138 : vector<1x256xf32> to vector<2x256xf32>
    %140 = arith.mulf %136, %139 : vector<2x256xf32>
    %c241_i32_95 = arith.constant 241 : i32
    %141 = tpu.dynamic_rotate %115 by %c241_i32_95 dim 1 : vector<2x256xf32>, i32 -> vector<2x256xf32>
    %c6_96 = arith.constant 6 : index
    %c0_97 = arith.constant 0 : index
    %c0_98 = arith.constant 0 : index
    %142 = vector.load %arg6[%c6_96, %c0_97, %c0_98] : memref<9x1x256xf32, #tpu.memory_space<vmem>>, vector<1x1x256xf32>
    %143 = vector.shape_cast %142 : vector<1x1x256xf32> to vector<1x256xf32>
    %144 = vector.broadcast %143 : vector<1x256xf32> to vector<2x256xf32>
    %145 = arith.mulf %141, %144 : vector<2x256xf32>
    %c240_i32_99 = arith.constant 240 : i32
    %146 = tpu.dynamic_rotate %115 by %c240_i32_99 dim 1 : vector<2x256xf32>, i32 -> vector<2x256xf32>
    %c7_100 = arith.constant 7 : index
    %c0_101 = arith.constant 0 : index
    %c0_102 = arith.constant 0 : index
    %147 = vector.load %arg6[%c7_100, %c0_101, %c0_102] : memref<9x1x256xf32, #tpu.memory_space<vmem>>, vector<1x1x256xf32>
    %148 = vector.shape_cast %147 : vector<1x1x256xf32> to vector<1x256xf32>
    %149 = vector.broadcast %148 : vector<1x256xf32> to vector<2x256xf32>
    %150 = arith.mulf %146, %149 : vector<2x256xf32>
    %c239_i32_103 = arith.constant 239 : i32
    %151 = tpu.dynamic_rotate %115 by %c239_i32_103 dim 1 : vector<2x256xf32>, i32 -> vector<2x256xf32>
    %c8_104 = arith.constant 8 : index
    %c0_105 = arith.constant 0 : index
    %c0_106 = arith.constant 0 : index
    %152 = vector.load %arg6[%c8_104, %c0_105, %c0_106] : memref<9x1x256xf32, #tpu.memory_space<vmem>>, vector<1x1x256xf32>
    %153 = vector.shape_cast %152 : vector<1x1x256xf32> to vector<1x256xf32>
    %154 = vector.broadcast %153 : vector<1x256xf32> to vector<2x256xf32>
    %155 = arith.mulf %151, %154 : vector<2x256xf32>
    %cst_107 = arith.constant 0.000000e+00 : f32
    %156 = vector.broadcast %cst_107 : f32 to vector<4x256xf32>
    %c0_108 = arith.constant 0 : index
    %c0_109 = arith.constant 0 : index
    %c0_110 = arith.constant 0 : index
    %157 = vector.load %arg4[%c0_108, %c0_109, %c0_110] : memref<9x4x2xf32, #tpu.memory_space<vmem>>, vector<1x4x2xf32>
    %158 = vector.shape_cast %157 : vector<1x4x2xf32> to vector<4x2xf32>
    %cst_111 = arith.constant dense<0.000000e+00> : vector<4x256xf32>
    %159 = tpu.matmul %158, %120, %cst_111 {dimension_numbers = #tpu.dot_dimension_numbers<[1], [0], [0], [1], [0, 0, 1, 1], [], []>} : vector<4x2xf32>, vector<2x256xf32>, vector<4x256xf32> -> vector<4x256xf32>
    %160 = arith.addf %156, %159 : vector<4x256xf32>
    %c1_112 = arith.constant 1 : index
    %c0_113 = arith.constant 0 : index
    %c0_114 = arith.constant 0 : index
    %161 = vector.load %arg4[%c1_112, %c0_113, %c0_114] : memref<9x4x2xf32, #tpu.memory_space<vmem>>, vector<1x4x2xf32>
    %162 = vector.shape_cast %161 : vector<1x4x2xf32> to vector<4x2xf32>
    %cst_115 = arith.constant dense<0.000000e+00> : vector<4x256xf32>
    %163 = tpu.matmul %162, %125, %cst_115 {dimension_numbers = #tpu.dot_dimension_numbers<[1], [0], [0], [1], [0, 0, 1, 1], [], []>} : vector<4x2xf32>, vector<2x256xf32>, vector<4x256xf32> -> vector<4x256xf32>
    %164 = arith.addf %160, %163 : vector<4x256xf32>
    %c2_116 = arith.constant 2 : index
    %c0_117 = arith.constant 0 : index
    %c0_118 = arith.constant 0 : index
    %165 = vector.load %arg4[%c2_116, %c0_117, %c0_118] : memref<9x4x2xf32, #tpu.memory_space<vmem>>, vector<1x4x2xf32>
    %166 = vector.shape_cast %165 : vector<1x4x2xf32> to vector<4x2xf32>
    %cst_119 = arith.constant dense<0.000000e+00> : vector<4x256xf32>
    %167 = tpu.matmul %166, %130, %cst_119 {dimension_numbers = #tpu.dot_dimension_numbers<[1], [0], [0], [1], [0, 0, 1, 1], [], []>} : vector<4x2xf32>, vector<2x256xf32>, vector<4x256xf32> -> vector<4x256xf32>
    %168 = arith.addf %164, %167 : vector<4x256xf32>
    %c3_120 = arith.constant 3 : index
    %c0_121 = arith.constant 0 : index
    %c0_122 = arith.constant 0 : index
    %169 = vector.load %arg4[%c3_120, %c0_121, %c0_122] : memref<9x4x2xf32, #tpu.memory_space<vmem>>, vector<1x4x2xf32>
    %170 = vector.shape_cast %169 : vector<1x4x2xf32> to vector<4x2xf32>
    %cst_123 = arith.constant dense<0.000000e+00> : vector<4x256xf32>
    %171 = tpu.matmul %170, %135, %cst_123 {dimension_numbers = #tpu.dot_dimension_numbers<[1], [0], [0], [1], [0, 0, 1, 1], [], []>} : vector<4x2xf32>, vector<2x256xf32>, vector<4x256xf32> -> vector<4x256xf32>
    %172 = arith.addf %168, %171 : vector<4x256xf32>
    %c4_124 = arith.constant 4 : index
    %c0_125 = arith.constant 0 : index
    %c0_126 = arith.constant 0 : index
    %173 = vector.load %arg4[%c4_124, %c0_125, %c0_126] : memref<9x4x2xf32, #tpu.memory_space<vmem>>, vector<1x4x2xf32>
    %174 = vector.shape_cast %173 : vector<1x4x2xf32> to vector<4x2xf32>
    %cst_127 = arith.constant dense<0.000000e+00> : vector<4x256xf32>
    %175 = tpu.matmul %174, %115, %cst_127 {dimension_numbers = #tpu.dot_dimension_numbers<[1], [0], [0], [1], [0, 0, 1, 1], [], []>} : vector<4x2xf32>, vector<2x256xf32>, vector<4x256xf32> -> vector<4x256xf32>
    %176 = arith.addf %172, %175 : vector<4x256xf32>
    %c5_128 = arith.constant 5 : index
    %c0_129 = arith.constant 0 : index
    %c0_130 = arith.constant 0 : index
    %177 = vector.load %arg4[%c5_128, %c0_129, %c0_130] : memref<9x4x2xf32, #tpu.memory_space<vmem>>, vector<1x4x2xf32>
    %178 = vector.shape_cast %177 : vector<1x4x2xf32> to vector<4x2xf32>
    %cst_131 = arith.constant dense<0.000000e+00> : vector<4x256xf32>
    %179 = tpu.matmul %178, %140, %cst_131 {dimension_numbers = #tpu.dot_dimension_numbers<[1], [0], [0], [1], [0, 0, 1, 1], [], []>} : vector<4x2xf32>, vector<2x256xf32>, vector<4x256xf32> -> vector<4x256xf32>
    %180 = arith.addf %176, %179 : vector<4x256xf32>
    %c6_132 = arith.constant 6 : index
    %c0_133 = arith.constant 0 : index
    %c0_134 = arith.constant 0 : index
    %181 = vector.load %arg4[%c6_132, %c0_133, %c0_134] : memref<9x4x2xf32, #tpu.memory_space<vmem>>, vector<1x4x2xf32>
    %182 = vector.shape_cast %181 : vector<1x4x2xf32> to vector<4x2xf32>
    %cst_135 = arith.constant dense<0.000000e+00> : vector<4x256xf32>
    %183 = tpu.matmul %182, %145, %cst_135 {dimension_numbers = #tpu.dot_dimension_numbers<[1], [0], [0], [1], [0, 0, 1, 1], [], []>} : vector<4x2xf32>, vector<2x256xf32>, vector<4x256xf32> -> vector<4x256xf32>
    %184 = arith.addf %180, %183 : vector<4x256xf32>
    %c7_136 = arith.constant 7 : index
    %c0_137 = arith.constant 0 : index
    %c0_138 = arith.constant 0 : index
    %185 = vector.load %arg4[%c7_136, %c0_137, %c0_138] : memref<9x4x2xf32, #tpu.memory_space<vmem>>, vector<1x4x2xf32>
    %186 = vector.shape_cast %185 : vector<1x4x2xf32> to vector<4x2xf32>
    %cst_139 = arith.constant dense<0.000000e+00> : vector<4x256xf32>
    %187 = tpu.matmul %186, %150, %cst_139 {dimension_numbers = #tpu.dot_dimension_numbers<[1], [0], [0], [1], [0, 0, 1, 1], [], []>} : vector<4x2xf32>, vector<2x256xf32>, vector<4x256xf32> -> vector<4x256xf32>
    %188 = arith.addf %184, %187 : vector<4x256xf32>
    %c8_140 = arith.constant 8 : index
    %c0_141 = arith.constant 0 : index
    %c0_142 = arith.constant 0 : index
    %189 = vector.load %arg4[%c8_140, %c0_141, %c0_142] : memref<9x4x2xf32, #tpu.memory_space<vmem>>, vector<1x4x2xf32>
    %190 = vector.shape_cast %189 : vector<1x4x2xf32> to vector<4x2xf32>
    %cst_143 = arith.constant dense<0.000000e+00> : vector<4x256xf32>
    %191 = tpu.matmul %190, %155, %cst_143 {dimension_numbers = #tpu.dot_dimension_numbers<[1], [0], [0], [1], [0, 0, 1, 1], [], []>} : vector<4x2xf32>, vector<2x256xf32>, vector<4x256xf32> -> vector<4x256xf32>
    %192 = arith.addf %188, %191 : vector<4x256xf32>
    %c0_144 = arith.constant 0 : index
    %c0_145 = arith.constant 0 : index
    %193 = vector.load %arg5[%c0_144, %c0_145] : memref<4x1xf32, #tpu.memory_space<vmem>>, vector<4x1xf32>
    %194 = vector.broadcast %193 : vector<4x1xf32> to vector<4x256xf32>
    %195 = arith.addf %192, %194 : vector<4x256xf32>
    %196 = arith.negf %195 : vector<4x256xf32>
    %197 = math.exp %196 : vector<4x256xf32>
    %cst_146 = arith.constant 1.000000e+00 : f32
    %198 = vector.broadcast %cst_146 : f32 to vector<4x256xf32>
    %199 = arith.addf %198, %197 : vector<4x256xf32>
    %200 = arith.divf %198, %199 : vector<4x256xf32>
    %201 = arith.mulf %195, %200 : vector<4x256xf32>
    %202 = arith.addf %201, %104 : vector<4x256xf32>
    %c1_147 = arith.constant 1 : index
    %c0_148 = arith.constant 0 : index
    %c0_149 = arith.constant 0 : index
    %203 = vector.load %arg7[%c1_147, %c0_148, %c0_149] : memref<2x4x256xf32, #tpu.memory_space<vmem>>, vector<1x4x256xf32>
    %204 = vector.shape_cast %203 : vector<1x4x256xf32> to vector<4x256xf32>
    %205 = vector.shape_cast %202 : vector<4x256xf32> to vector<1x4x256xf32>
    tpu.vector_store %arg7[%c1_147, %c0_148, %c0_149], %205 {strides = array<i32>} : memref<2x4x256xf32, #tpu.memory_space<vmem>>, vector<1x4x256xf32>,
    return
  }
  func.func @transform_0(%arg0: i32) -> (i32, i32, i32) {
    %c0_i32 = arith.constant 0 : i32
    %c0_i32_0 = arith.constant 0 : i32
    %c0_i32_1 = arith.constant 0 : i32
    return %arg0, %c0_i32, %c0_i32_0 : i32, i32, i32
  }
  func.func @transform_1(%arg0: i32) -> (i32, i32) {
    %c0_i32 = arith.constant 0 : i32
    %c0_i32_0 = arith.constant 0 : i32
    %c0_i32_1 = arith.constant 0 : i32
    return %c0_i32, %c0_i32_0 : i32, i32
  }
  func.func @transform_2(%arg0: i32) -> (i32, i32) {
    %c0_i32 = arith.constant 0 : i32
    %c0_i32_0 = arith.constant 0 : i32
    %c0_i32_1 = arith.constant 0 : i32
    return %c0_i32, %c0_i32_0 : i32, i32
  }
  func.func @transform_3(%arg0: i32) -> (i32, i32, i32) {
    %c0_i32 = arith.constant 0 : i32
    %c0_i32_0 = arith.constant 0 : i32
    %c0_i32_1 = arith.constant 0 : i32
    %c0_i32_2 = arith.constant 0 : i32
    return %c0_i32, %c0_i32_0, %c0_i32_1 : i32, i32, i32
  }
  func.func @transform_4(%arg0: i32) -> (i32, i32) {
    %c0_i32 = arith.constant 0 : i32
    %c0_i32_0 = arith.constant 0 : i32
    %c0_i32_1 = arith.constant 0 : i32
    return %c0_i32, %c0_i32_0 : i32, i32
  }
  func.func @transform_5(%arg0: i32) -> (i32, i32, i32) {
    %c0_i32 = arith.constant 0 : i32
    %c0_i32_0 = arith.constant 0 : i32
    %c0_i32_1 = arith.constant 0 : i32
    %c0_i32_2 = arith.constant 0 : i32
    return %c0_i32, %c0_i32_0, %c0_i32_1 : i32, i32, i32
  }
  func.func @transform_6(%arg0: i32) -> (i32, i32, i32) {
    %c0_i32 = arith.constant 0 : i32
    %c0_i32_0 = arith.constant 0 : i32
    %c0_i32_1 = arith.constant 0 : i32
    return %arg0, %c0_i32, %c0_i32_0 : i32, i32, i32
  }
}

</mosaic_0001>

<bundles_post_ra>
// kernel: tpu_custom_call.1
= control target key start
LH: loop header
LB: loop body
LE: loop exit
PB: predicated region body
PF: predicated region fallthrough
CT: control target
= control target key end

     0   :  { %vm38_vm0 = vcmask 1043456   ;;  %v2311_v2 = vmov 0.0   ;;  %s2784_s0 = inlined_call_operand.vmem [shape: f32[2,4,256], index: 0, kind: input, shape index: {}]   ;;  %s2785_s1 = inlined_call_operand.vmem [shape: f32[2,4], index: 1, kind: input, shape index: {}]   ;;  %s2786_s2 = inlined_call_operand.vmem [shape: f32[2,1], index: 2, kind: input, shape index: {}]   ;;  %s2787_s3 = inlined_call_operand.vmem [shape: f32[9,4,2], index: 3, kind: input, shape index: {}]   ;;  %s2788_s4 = inlined_call_operand.vmem [shape: f32[4,1], index: 4, kind: input, shape index: {}]   ;;  %s2789_s5 = inlined_call_operand.vmem [shape: f32[9,1,256], index: 5, kind: input, shape index: {}]   ;;  %s2790_s6 = inlined_call_operand.hbm [shape: f32[2,4,256], index: 6, kind: output, shape index: {}]  }
   0x1   :  { %v2362_v0 = vld [vmem:[%s2784_s0] sm:$0xff]  ;;  %107 = vmatprep.mubr.f32.mxu0 %v2311_v2  ;;  %383 = vmatprep.mubr.f32.mxu1 %v2311_v2 }
   0x2   :  { %v2366_v1 = vcombine.high %v2362_v0, %v2362_v0  ;;  %v26_v3 = vld [vmem:[%s2786_s2] sm:$0x3] }
   0x3   :  { %11 = vsyncpa [#allocation3], 0  ;;  %v25_v4 = vld [vmem:[%s2785_s1] sm:$0x3]  ;;  %vm34_vm1 = vcmask 31744   ;;  %v2312_v5 = vmov 0   ;;  %v132_v22 = vlaneseq }
   0x4   :  { %2253 = vset.pattern.permute.xlu0 %v2312_v5  ;;  %2254 = vset.pattern.permute.xlu1 %v2312_v5  ;;  %s2313_s27 = smov 17   ;;  %s2314_s28 = smov 1   ;;  %v1091_v21 = vld [vmem:[%s2786_s2] sm:$0x3]  ;;  %v2148_v31 = vld [vmem:[%s2789_s5 + $0x6] sm:$0x3] }
   0x5   :  { %2141 = vmatprep.subr.msk.mxu0 %vm38_vm0, %v2366_v1  ;;  %29 = vperm.xlu0 %2253, %v26_v3   ;;  %s2315_s29 = smov 127   ;;  %s2316_s30 = smov 112   ;;  %v140_v23 = vshrl.u32 %v132_v22, 7  ;;  %v2421_v24 = vand.u32 127, %v132_v22  ;;  %v137_v27 = vld [vmem:[%s2789_s5] sm:$0x3] }
   0x6   :  { %2142 = vmatpush1.msk.msra.mxu0 %vm38_vm0, %v2362_v0  ;;  %s2317_s9 = smov 16   ;;  %s2318_s10 = smov 15   ;;  %vm312_vm4 = vcmask 1041408   ;;  %v305_v40 = vld [vmem:[%s2787_s3] sm:$0xf]  ;;  %vm308_vm5 = vcmask 15360  }
   0x7   :  { %2143 = vmatmul.mubr.msk.f32.vlgmr.msra.gmra.mxu0 %vm34_vm1, %v25_v4  ;;  %s2319_s11 = smov 113   ;;  %s2320_s2 = smov 111   ;;  %v2423_v25 = vsub.s32 0, %v140_v23  ;;  %v2425_v26 = vsub.s32 1, %v140_v23  ;;  %vm134_vm2 = vcmp.lt.s32.totalorder %v2421_v24, 17  ;;  %vm199_vm3 = vcmp.lt.s32.totalorder %v2421_v24, 1 }
   0x8   :  { %463 = vmatprep.mubr.f32.mxu0 %v2311_v2  ;;  %v2149_v41 = vld [vmem:[%s2789_s5 + $0xa] sm:$0x3]  ;;  %vm221_vm6 = vcmp.lt.s32.totalorder %v2421_v24, 127  ;;  %v2164_v50 = vld [vmem:[%s2787_s3 + $0xc] sm:$0xf]  ;;  %vm265_vm7 = vcmp.lt.s32.totalorder %v2421_v24, 112 }
   0x9   :  { %v142_v29 = vrot.slane %v137_v27, %v2423_v25  ;;  %v146_v30 = vrot.slane %v137_v27, %v2425_v26  ;;  %v208_v38 = vrot.slane %v2148_v31, %v2423_v25  ;;  %v212_v39 = vrot.slane %v2148_v31, %v2425_v26  ;;  %v2151_v51 = vld [vmem:[%s2789_s5 + $0xe] sm:$0x3]  ;;  %v2172_v59 = vld [vmem:[%s2787_s3 + $0x14] sm:$0xf] }
   0xa   :  { %v230_v48 = vrot.slane %v2149_v41, %v2423_v25  ;;  %v234_v49 = vrot.slane %v2149_v41, %v2425_v26  ;;  %v274_v57 = vrot.slane %v2151_v51, %v2423_v25  ;;  %v278_v58 = vrot.slane %v2151_v51, %v2425_v26  ;;  %v2483_v60 = vld [vmem:[%s2784_s0 + $0x8] sm:$0xff]  ;;  %v2176_v51 = vld [vmem:[%s2787_s3 + $0x18] sm:$0xf] }
   0xb   :  { %vm155_vm8 = vcmp.lt.s32.totalorder %v2421_v24, 16  ;;  %vm177_vm9 = vcmp.lt.s32.totalorder %v2421_v24, 15  ;;  %vm243_vm10 = vcmp.lt.s32.totalorder %v2421_v24, 113  ;;  %vm287_vm11 = vcmp.lt.s32.totalorder %v2421_v24, 111 }
  0x80   :  { %v30_v6 = vpop.permute.xlu0 %29 }
  0xc7   :  { %v109_v7 = vpop.f32.mrf.mxu0 }
  0xc8   :  { %v110_v8 = vadd.f32 %v109_v7, %v30_v6  ;;  %v2180_v7 = vld [vmem:[%s2787_s3 + $0x1c] sm:$0xf] }
  0xc9   :  { %v111_v9 = vpop.f32.mrf.mxu0 }
  0xca   :  { %v2144_v10 = vmul.f32 -1.442695, %v110_v8  ;;  %v112_v11 = vadd.f32 %v111_v9, %v30_v6  ;;  %v2494_v6 = vcombine.high %v2483_v60, %v2483_v60 }
  0xcc   :  { %2257 = vpow2.f32 %v2144_v10  ;;  %v2145_v12 = vmul.f32 -1.442695, %v112_v11  ;;  %v2146_v10 = vld [vmem:[%s2789_s5 + $0x2] sm:$0x3] }
  0xce   :  { %2259 = vpow2.f32 %v2145_v12  ;;  %v164_v12 = vrot.slane %v2146_v10, %v2423_v25 }
  0xd9   :  { %v2258_v13 = vpop.eup %2257 }
  0xda   :  { %v120_v14 = vadd.f32 1.0, %v2258_v13  ;;  %v168_v13 = vrot.slane %v2146_v10, %v2425_v26 }
  0xdb   :  { %v2260_v15 = vpop.eup %2259 }
  0xdc   :  { %2261 = vrcp.f32 %v120_v14  ;;  %v121_v16 = vadd.f32 1.0, %v2260_v15  ;;  %v2147_v14 = vld [vmem:[%s2789_s5 + $0x4] sm:$0x3] }
  0xdd   :  { %v186_v22 = vrot.slane %v2147_v14, %v2423_v25  ;;  %v190_v23 = vrot.slane %v2147_v14, %v2425_v26 }
  0xde   :  { %2263 = vrcp.f32 %v121_v16 }
  0xe9   :  { %v2262_v17 = vpop.eup %2261 }
  0xea   :  { %v2382_v18 = vmul.f32 %v2262_v17, %v110_v8  ;;  %v1090_v8 = vld [vmem:[%s2785_s1] sm:$0x3] }
  0xeb   :  { %v2264_v19 = vpop.eup %2263 }
  0xec   :  { %v2384_v20 = vmul.f32 %v2264_v19, %v112_v11  ;;  %128 = vrot.lane.b32.xlu0 %v2382_v18, %s2313_s27 }
  0xee   :  { %130 = vrot.lane.b32.xlu1 %v2384_v20, %s2313_s27 }
  0xf0   :  { %197 = vrot.lane.b32.xlu0 %v2384_v20, %s2314_s28 }
  0xf2   :  { %195 = vrot.lane.b32.xlu1 %v2382_v18, %s2314_s28 }
  0xf4   :  { %219 = vrot.lane.b32.xlu0 %v2384_v20, %s2315_s29 }
  0xf6   :  { %217 = vrot.lane.b32.xlu1 %v2382_v18, %s2315_s29 }
  0xf8   :  { %263 = vrot.lane.b32.xlu0 %v2384_v20, %s2316_s30 }
  0xfa   :  { %261 = vrot.lane.b32.xlu1 %v2382_v18, %s2316_s30 }
  0xfc   :  { %151 = vrot.lane.b32.xlu0 %v2382_v18, %s2317_s9 }
  0xfe   :  { %1094 = vperm.xlu1 %2254, %v1091_v21  }
 0x100   :  { %173 = vrot.lane.b32.xlu0 %v2382_v18, %s2318_s10 }
 0x102   :  { %153 = vrot.lane.b32.xlu1 %v2384_v20, %s2317_s9 }
 0x104   :  { %239 = vrot.lane.b32.xlu0 %v2382_v18, %s2319_s11 }
 0x106   :  { %175 = vrot.lane.b32.xlu1 %v2384_v20, %s2318_s10 }
 0x108   :  { %283 = vrot.lane.b32.xlu0 %v2382_v18, %s2320_s2 }
 0x10a   :  { %241 = vrot.lane.b32.xlu1 %v2384_v20, %s2319_s11 }
 0x10e   :  { %285 = vrot.lane.b32.xlu1 %v2384_v20, %s2320_s2 }
 0x15e   :  { %v129_v28 = vpop.permute.xlu0 %128 }
 0x160   :  { %v131_v32 = vpop.permute.xlu1 %130 }
 0x161   :  { %v135_v33 = vsel %vm134_vm2, %v129_v28, %v131_v32  ;;  %v136_v34 = vsel %vm134_vm2, %v131_v32, %v129_v28  ;;  %v2153_v28 = vld [vmem:[%s2787_s3 + $0x4] sm:$0xf] }
 0x162   :  { %v149_v35 = vmul.f32 %v142_v29, %v136_v34  ;;  %v150_v36 = vmul.f32 %v146_v30, %v135_v33  ;;  %v198_v37 = vpop.permute.xlu0 %197  ;;  %v2150_v29 = vld [vmem:[%s2789_s5 + $0xc] sm:$0x3] }
 0x164   :  { %v196_v42 = vpop.permute.xlu1 %195  ;;  %2157 = vmatprep.subr.msk.mxu0 %vm312_vm4, %v150_v36  ;;  %v256_v36 = vrot.slane %v2150_v29, %v2425_v26 }
 0x165   :  { %v200_v43 = vsel %vm199_vm3, %v196_v42, %v198_v37  ;;  %v201_v44 = vsel %vm199_vm3, %v198_v37, %v196_v42  ;;  %2158 = vmatpush1.msk.msra.mxu0 %vm312_vm4, %v149_v35  ;;  %v2160_v37 = vld [vmem:[%s2787_s3 + $0x8] sm:$0xf] }
 0x166   :  { %v215_v45 = vmul.f32 %v208_v38, %v201_v44  ;;  %v216_v46 = vmul.f32 %v212_v39, %v200_v43  ;;  %2159 = vmatmul.mubr.msk.f32.vlgmr.msra.gmra.mxu0 %vm308_vm5, %v305_v40  ;;  %v220_v47 = vpop.permute.xlu0 %219  ;;  %v2152_v38 = vld [vmem:[%s2789_s5 + $0x10] sm:$0x3]  ;;  %v252_v40 = vrot.slane %v2150_v29, %v2423_v25 }
 0x167   :  { %629 = vmatprep.mubr.f32.mxu0 %v2311_v2  ;;  %v300_v44 = vrot.slane %v2152_v38, %v2425_v26 }
 0x168   :  { %v218_v52 = vpop.permute.xlu1 %217  ;;  %2165 = vmatprep.subr.msk.mxu0 %vm312_vm4, %v216_v46 }
 0x169   :  { %v222_v53 = vsel %vm221_vm6, %v218_v52, %v220_v47  ;;  %v223_v54 = vsel %vm221_vm6, %v220_v47, %v218_v52  ;;  %2166 = vmatpush1.msk.msra.mxu0 %vm312_vm4, %v215_v45  ;;  %v2168_v45 = vld [vmem:[%s2787_s3 + $0x10] sm:$0xf] }
 0x16a   :  { %v237_v55 = vmul.f32 %v230_v48, %v222_v53  ;;  %v238_v56 = vmul.f32 %v234_v49, %v223_v54  ;;  %2167 = vmatmul.mubr.msk.f32.vlgmr.msra.gmra.mxu0 %vm308_vm5, %v2164_v50  ;;  %v264_v61 = vpop.permute.xlu0 %263  ;;  %v2184_v53 = vld [vmem:[%s2787_s3 + $0x20] sm:$0xf] }
 0x16b   :  { %797 = vmatprep.mubr.f32.mxu0 %v2311_v2 }
 0x16c   :  { %v262_v62 = vpop.permute.xlu1 %261  ;;  %2173 = vmatprep.subr.msk.mxu0 %vm312_vm4, %v238_v56 }
 0x16d   :  { %v266_v63 = vsel %vm265_vm7, %v262_v62, %v264_v61  ;;  %v267_v3 = vsel %vm265_vm7, %v264_v61, %v262_v62  ;;  %2174 = vmatpush1.msk.msra.mxu0 %vm312_vm4, %v237_v55 }
 0x16e   :  { %v281_v4 = vmul.f32 %v274_v57, %v266_v63  ;;  %v282_v5 = vmul.f32 %v278_v58, %v267_v3  ;;  %2175 = vmatmul.mubr.msk.f32.vlgmr.msra.gmra.mxu0 %vm308_vm5, %v2172_v59  ;;  %v152_v9 = vpop.permute.xlu0 %151 }
 0x16f   :  { %965 = vmatprep.mubr.f32.mxu0 %v2311_v2 }
 0x170   :  { %2181 = vmatprep.subr.msk.mxu0 %vm312_vm4, %v282_v5 }
 0x171   :  { %2182 = vmatpush1.msk.msra.mxu0 %vm312_vm4, %v281_v4 }
 0x172   :  { %2183 = vmatmul.mubr.msk.f32.vlgmr.msra.gmra.mxu0 %vm308_vm5, %v2180_v7  ;;  %2191 = vmatprep.subr.msk.mxu0 %vm38_vm0, %v2494_v6  ;;  %v174_v15 = vpop.permute.xlu0 %173 }
 0x173   :  { %2192 = vmatpush1.msk.msra.mxu0 %vm38_vm0, %v2483_v60  ;;  %1170 = vmatprep.mubr.f32.mxu0 %v2311_v2 }
 0x176   :  { %2193 = vmatmul.mubr.msk.f32.vlgmr.msra.gmra.mxu0 %vm34_vm1, %v1090_v8  ;;  %v240_v33 = vpop.permute.xlu0 %239 }
 0x177   :  { %1506 = vmatprep.mubr.f32.mxu0 %v2311_v2 }
 0x179   :  { %v2516_v11 = vpop.permute.xlu1 %1094 }
 0x17a   :  { %v284_v46 = vpop.permute.xlu0 %283 }
 0x17d   :  { %v154_v16 = vpop.permute.xlu1 %153 }
 0x17e   :  { %v156_v17 = vsel %vm155_vm8, %v152_v9, %v154_v16  ;;  %v157_v19 = vsel %vm155_vm8, %v154_v16, %v152_v9 }
 0x17f   :  { %v171_v21 = vmul.f32 %v164_v12, %v157_v19  ;;  %v172_v27 = vmul.f32 %v168_v13, %v156_v17 }
 0x181   :  { %v176_v30 = vpop.permute.xlu1 %175  ;;  %2154 = vmatprep.subr.msk.mxu1 %vm312_vm4, %v172_v27 }
 0x182   :  { %v178_v31 = vsel %vm177_vm9, %v174_v15, %v176_v30  ;;  %v179_v32 = vsel %vm177_vm9, %v176_v30, %v174_v15  ;;  %2155 = vmatpush1.msk.msra.mxu1 %vm312_vm4, %v171_v21 }
 0x183   :  { %v193_v34 = vmul.f32 %v186_v22, %v179_v32  ;;  %v194_v35 = vmul.f32 %v190_v23, %v178_v31  ;;  %2156 = vmatmul.mubr.msk.f32.vlgmr.msra.gmra.mxu1 %vm308_vm5, %v2153_v28 }
 0x184   :  { %545 = vmatprep.mubr.f32.mxu1 %v2311_v2 }
 0x185   :  { %v242_v39 = vpop.permute.xlu1 %241  ;;  %2161 = vmatprep.subr.msk.mxu1 %vm312_vm4, %v194_v35 }
 0x186   :  { %v245_v41 = vsel %vm243_vm10, %v242_v39, %v240_v33  ;;  %2162 = vmatpush1.msk.msra.mxu1 %vm312_vm4, %v193_v34  ;;  %v244_v42 = vsel %vm243_vm10, %v240_v33, %v242_v39 }
 0x187   :  { %v260_v43 = vmul.f32 %v256_v36, %v245_v41  ;;  %2163 = vmatmul.mubr.msk.f32.vlgmr.msra.gmra.mxu1 %vm308_vm5, %v2160_v37  ;;  %2169 = vmatprep.subr.msk.mxu1 %vm312_vm4, %v2384_v20  ;;  %v259_v48 = vmul.f32 %v252_v40, %v244_v42  ;;  %v296_v20 = vrot.slane %v2152_v38, %v2423_v25 }
 0x188   :  { %2170 = vmatpush1.msk.msra.mxu1 %vm312_vm4, %v2382_v18  ;;  %713 = vmatprep.mubr.f32.mxu1 %v2311_v2 }
 0x189   :  { %v286_v47 = vpop.permute.xlu1 %285  ;;  %2177 = vmatprep.subr.msk.mxu1 %vm312_vm4, %v260_v43 }
 0x18a   :  { %v289_v49 = vsel %vm287_vm11, %v286_v47, %v284_v46  ;;  %v288_v50 = vsel %vm287_vm11, %v284_v46, %v286_v47  ;;  %v2196_v46 = vld [vmem:[%s2789_s5 + $0x2] sm:$0x3] }
 0x18b   :  { %v304_v18 = vmul.f32 %v300_v44, %v289_v49  ;;  %2171 = vmatmul.mubr.msk.f32.vlgmr.msra.gmra.mxu1 %vm308_vm5, %v2168_v45  ;;  %v303_v52 = vmul.f32 %v296_v20, %v288_v50  ;;  %v1058_v44 = vld [vmem:[%s2788_s4] sm:$0xf]  ;;  %v1226_v20 = vrot.slane %v2196_v46, %v2425_v26 }
 0x18c   :  { %2178 = vmatpush1.msk.msra.mxu1 %vm312_vm4, %v259_v48  ;;  %881 = vmatprep.mubr.f32.mxu1 %v2311_v2  ;;  %v2094_v45 = vld [vmem:[%s2788_s4] sm:$0xf]  ;;  %v1222_v48 = vrot.slane %v2196_v46, %v2423_v25  ;;  %v2201_v46 = vld [vmem:[%s2789_s5 + $0xe] sm:$0x3] }
 0x18d   :  { %2185 = vmatprep.subr.msk.mxu1 %vm312_vm4, %v304_v18  ;;  %v1197_v49 = vld [vmem:[%s2789_s5] sm:$0x3] }
 0x18f   :  { %2179 = vmatmul.mubr.msk.f32.vlgmr.msra.gmra.mxu1 %vm308_vm5, %v2176_v51 }
 0x190   :  { %2186 = vmatpush1.msk.msra.mxu1 %vm312_vm4, %v303_v52  ;;  %1049 = vmatprep.mubr.f32.mxu1 %v2311_v2 }
 0x193   :  { %2187 = vmatmul.mubr.msk.f32.vlgmr.msra.gmra.mxu1 %vm308_vm5, %v2184_v53 }
 0x194   :  { %1426 = vmatprep.mubr.f32.mxu1 %v2311_v2 }
 0x226   :  { %v465_v54 = vpop.f32.mrf.mxu0 }
 0x228   :  { %v467_v55 = vpop.f32.mrf.mxu0 }
 0x22a   :  { %v631_v56 = vpop.f32.mrf.mxu0 }
 0x22c   :  { %v633_v57 = vpop.f32.mrf.mxu0 }
 0x22e   :  { %v799_v58 = vpop.f32.mrf.mxu0 }
 0x230   :  { %v801_v59 = vpop.f32.mrf.mxu0 }
 0x232   :  { %v967_v61 = vpop.f32.mrf.mxu0 }
 0x234   :  { %v969_v62 = vpop.f32.mrf.mxu0 }
 0x236   :  { %v1172_v63 = vpop.f32.mrf.mxu0 }
 0x237   :  { %v1173_v3 = vadd.f32 %v1172_v63, %v2516_v11 }
 0x238   :  { %v1174_v4 = vpop.f32.mrf.mxu0 }
 0x239   :  { %v2194_v5 = vmul.f32 -1.442695, %v1173_v3  ;;  %v1175_v7 = vadd.f32 %v1174_v4, %v2516_v11 }
 0x23b   :  { %2265 = vpow2.f32 %v2194_v5  ;;  %v2195_v8 = vmul.f32 -1.442695, %v1175_v7 }
 0x23d   :  { %2267 = vpow2.f32 %v2195_v8  ;;  %v2198_v8 = vld [vmem:[%s2789_s5 + $0x6] sm:$0x3] }
 0x243   :  { %v385_v9 = vpop.f32.mrf.mxu1 }
 0x244   :  { %v466_v12 = vadd.f32 %v465_v54, %v385_v9  ;;  %v1351_v9 = vld [vmem:[%s2787_s3] sm:$0xf] }
 0x245   :  { %v387_v10 = vpop.f32.mrf.mxu1 }
 0x246   :  { %v468_v15 = vadd.f32 %v467_v55, %v387_v10  ;;  %v1202_v55 = vrot.slane %v1197_v49, %v2423_v25 }
 0x247   :  { %v547_v13 = vpop.f32.mrf.mxu1 }
 0x248   :  { %v2266_v14 = vpop.eup %2265  ;;  %v552_v16 = vadd.f32 %v547_v13, %v466_v12 }
 0x249   :  { %v1183_v17 = vadd.f32 1.0, %v2266_v14  ;;  %v549_v19 = vpop.f32.mrf.mxu1 }
 0x24a   :  { %v2268_v21 = vpop.eup %2267  ;;  %v553_v22 = vadd.f32 %v549_v19, %v468_v15  ;;  %v636_v23 = vadd.f32 %v631_v56, %v552_v16  ;;  %v1206_v56 = vrot.slane %v1197_v49, %v2425_v26  ;;  %v1266_v19 = vrot.slane %v2198_v8, %v2425_v26 }
 0x24b   :  { %2269 = vrcp.f32 %v1183_v17  ;;  %v1184_v27 = vadd.f32 1.0, %v2268_v21  ;;  %v715_v28 = vpop.f32.mrf.mxu1  ;;  %v1262_v17 = vrot.slane %v2198_v8, %v2423_v25  ;;  %v2199_v21 = vld [vmem:[%s2789_s5 + $0xa] sm:$0x3] }
 0x24c   :  { %v720_v29 = vadd.f32 %v715_v28, %v636_v23  ;;  %v637_v11 = vadd.f32 %v633_v57, %v553_v22  ;;  %v2197_v57 = vld [vmem:[%s2789_s5 + $0x4] sm:$0x3]  ;;  %v2210_v22 = vld [vmem:[%s2787_s3 + $0x8] sm:$0xf] }
 0x24d   :  { %2271 = vrcp.f32 %v1184_v27  ;;  %v717_v30 = vpop.f32.mrf.mxu1  ;;  %v1242_v5 = vrot.slane %v2197_v57, %v2423_v25 }
 0x24e   :  { %v721_v31 = vadd.f32 %v717_v30, %v637_v11  ;;  %v804_v32 = vadd.f32 %v799_v58, %v720_v29  ;;  %v2203_v58 = vld [vmem:[%s2787_s3 + $0x4] sm:$0xf]  ;;  %v1282_v29 = vrot.slane %v2199_v21, %v2423_v25 }
 0x24f   :  { %v883_v33 = vpop.f32.mrf.mxu1 }
 0x250   :  { %v888_v34 = vadd.f32 %v883_v33, %v804_v32  ;;  %v805_v35 = vadd.f32 %v801_v59, %v721_v31  ;;  %v1286_v32 = vrot.slane %v2199_v21, %v2425_v26  ;;  %v2200_v33 = vld [vmem:[%s2789_s5 + $0xc] sm:$0x3] }
 0x251   :  { %v885_v36 = vpop.f32.mrf.mxu1 }
 0x252   :  { %v889_v37 = vadd.f32 %v885_v36, %v805_v35  ;;  %v2594_v38 = vadd.f32 %v967_v61, %v888_v34  ;;  %v2214_v34 = vld [vmem:[%s2787_s3 + $0xc] sm:$0xf]  ;;  %v2218_v35 = vld [vmem:[%s2787_s3 + $0x10] sm:$0xf] }
 0x254   :  { %v2596_v39 = vadd.f32 %v969_v62, %v889_v37 }
 0x258   :  { %v2270_v40 = vpop.eup %2269 }
 0x259   :  { %v2598_v41 = vmul.f32 %v2270_v40, %v1173_v3 }
 0x25a   :  { %v2272_v42 = vpop.eup %2271 }
 0x25b   :  { %v2600_v43 = vmul.f32 %v2272_v42, %v1175_v7  ;;  %1211 = vrot.lane.b32.xlu0 %v2598_v41, %s2317_s9  ;;  %v1246_v7 = vrot.slane %v2197_v57, %v2425_v26 }
 0x25d   :  { %1213 = vrot.lane.b32.xlu1 %v2600_v43, %s2317_s9 }
 0x25f   :  { %1191 = vrot.lane.b32.xlu0 %v2598_v41, %s2313_s27 }
 0x261   :  { %1193 = vrot.lane.b32.xlu1 %v2600_v43, %s2313_s27 }
 0x263   :  { %1231 = vrot.lane.b32.xlu0 %v2598_v41, %s2318_s10 }
 0x265   :  { %1233 = vrot.lane.b32.xlu1 %v2600_v43, %s2318_s10 }
 0x267   :  { %1251 = vrot.lane.b32.xlu0 %v2598_v41, %s2314_s28 }
 0x269   :  { %1253 = vrot.lane.b32.xlu1 %v2600_v43, %s2314_s28 }
 0x26b   :  { %1271 = vrot.lane.b32.xlu0 %v2598_v41, %s2315_s29 }
 0x26d   :  { %1273 = vrot.lane.b32.xlu1 %v2600_v43, %s2315_s29 }
 0x26f   :  { %1291 = vrot.lane.b32.xlu0 %v2598_v41, %s2319_s11 }
 0x271   :  { %1293 = vrot.lane.b32.xlu1 %v2600_v43, %s2319_s11 }
 0x273   :  { %1311 = vrot.lane.b32.xlu0 %v2598_v41, %s2316_s30 }
 0x275   :  { %1313 = vrot.lane.b32.xlu1 %v2600_v43, %s2316_s30 }
 0x277   :  { %1331 = vrot.lane.b32.xlu0 %v2598_v41, %s2320_s2 }
 0x279   :  { %1333 = vrot.lane.b32.xlu1 %v2600_v43, %s2320_s2 }
 0x27b   :  { %1061 = vperm.xlu0 %2253, %v1058_v44  }
 0x27d   :  { %2097 = vperm.xlu1 %2254, %v2094_v45   ;;  %v1306_v45 = vrot.slane %v2200_v33, %v2425_v26 }
 0x2cd   :  { %v1212_v47 = vpop.permute.xlu0 %1211 }
 0x2cf   :  { %v1214_v50 = vpop.permute.xlu1 %1213 }
 0x2d0   :  { %v1215_v18 = vsel %vm155_vm8, %v1212_v47, %v1214_v50  ;;  %v1216_v51 = vsel %vm155_vm8, %v1214_v50, %v1212_v47  ;;  %v2222_v47 = vld [vmem:[%s2787_s3 + $0x14] sm:$0xf] }
 0x2d1   :  { %v1229_v52 = vmul.f32 %v1222_v48, %v1216_v51  ;;  %v1230_v53 = vmul.f32 %v1226_v20, %v1215_v18  ;;  %v1192_v54 = vpop.permute.xlu0 %1191 }
 0x2d3   :  { %v1194_v59 = vpop.permute.xlu1 %1193  ;;  %2204 = vmatprep.subr.msk.mxu1 %vm312_vm4, %v1230_v53  ;;  %v1326_v53 = vrot.slane %v2201_v46, %v2425_v26 }
 0x2d4   :  { %v1195_v61 = vsel %vm134_vm2, %v1192_v54, %v1194_v59  ;;  %v1196_v62 = vsel %vm134_vm2, %v1194_v59, %v1192_v54  ;;  %2205 = vmatpush1.msk.msra.mxu1 %vm312_vm4, %v1229_v52  ;;  %v1322_v52 = vrot.slane %v2201_v46, %v2423_v25  ;;  %v2202_v54 = vld [vmem:[%s2789_s5 + $0x10] sm:$0x3] }
 0x2d5   :  { %v1209_v63 = vmul.f32 %v1202_v55, %v1196_v62  ;;  %v1210_v3 = vmul.f32 %v1206_v56, %v1195_v61  ;;  %v1232_v4 = vpop.permute.xlu0 %1231  ;;  %2206 = vmatmul.mubr.msk.f32.vlgmr.msra.gmra.mxu1 %vm308_vm5, %v2203_v58  ;;  %v2226_v55 = vld [vmem:[%s2787_s3 + $0x18] sm:$0xf]  ;;  %v1342_v62 = vrot.slane %v2202_v54, %v2423_v25 }
 0x2d6   :  { %1587 = vmatprep.mubr.f32.mxu1 %v2311_v2 }
 0x2d7   :  { %v1234_v10 = vpop.permute.xlu1 %1233  ;;  %2207 = vmatprep.subr.msk.mxu0 %vm312_vm4, %v1210_v3  ;;  %v2230_v3 = vld [vmem:[%s2787_s3 + $0x1c] sm:$0xf] }
 0x2d8   :  { %v1235_v12 = vsel %vm177_vm9, %v1232_v4, %v1234_v10  ;;  %v1236_v13 = vsel %vm177_vm9, %v1234_v10, %v1232_v4  ;;  %2208 = vmatpush1.msk.msra.mxu0 %vm312_vm4, %v1209_v63  ;;  %v1346_v63 = vrot.slane %v2202_v54, %v2425_v26 }
 0x2d9   :  { %v1249_v14 = vmul.f32 %v1242_v5, %v1236_v13  ;;  %v1250_v15 = vmul.f32 %v1246_v7, %v1235_v12  ;;  %v1252_v16 = vpop.permute.xlu0 %1251  ;;  %2209 = vmatmul.mubr.msk.f32.vlgmr.msra.gmra.mxu0 %vm308_vm5, %v1351_v9  ;;  %v1051_v9 = vpop.f32.mrf.mxu1 }
 0x2da   :  { %1670 = vmatprep.mubr.f32.mxu0 %v2311_v2  ;;  %v1056_v24 = vadd.f32 %v1051_v9, %v2594_v38 }
 0x2db   :  { %v1254_v23 = vpop.permute.xlu1 %1253  ;;  %2211 = vmatprep.subr.msk.mxu1 %vm312_vm4, %v1250_v15  ;;  %v1053_v10 = vpop.f32.mrf.mxu1 }
 0x2dc   :  { %v1255_v27 = vsel %vm199_vm3, %v1252_v16, %v1254_v23  ;;  %v1256_v28 = vsel %vm199_vm3, %v1254_v23, %v1252_v16  ;;  %2212 = vmatpush1.msk.msra.mxu1 %vm312_vm4, %v1249_v14  ;;  %v1057_v12 = vadd.f32 %v1053_v10, %v2596_v39 }
 0x2dd   :  { %v1269_v11 = vmul.f32 %v1262_v17, %v1256_v28  ;;  %v1270_v30 = vmul.f32 %v1266_v19, %v1255_v27  ;;  %2219 = vmatprep.subr.msk.mxu1 %vm312_vm4, %v2600_v43  ;;  %v1272_v31 = vpop.permute.xlu0 %1271  ;;  %2213 = vmatmul.mubr.msk.f32.vlgmr.msra.gmra.mxu1 %vm308_vm5, %v2210_v22 }
 0x2de   :  { %2220 = vmatpush1.msk.msra.mxu1 %vm312_vm4, %v2598_v41  ;;  %1753 = vmatprep.mubr.f32.mxu1 %v2311_v2  ;;  %v1302_v41 = vrot.slane %v2200_v33, %v2423_v25 }
 0x2df   :  { %v1274_v36 = vpop.permute.xlu1 %1273  ;;  %2215 = vmatprep.subr.msk.mxu0 %vm312_vm4, %v1270_v30 }
 0x2e0   :  { %v1275_v37 = vsel %vm221_vm6, %v1272_v31, %v1274_v36  ;;  %v1276_v40 = vsel %vm221_vm6, %v1274_v36, %v1272_v31  ;;  %2216 = vmatpush1.msk.msra.mxu0 %vm312_vm4, %v1269_v11 }
 0x2e1   :  { %v1289_v42 = vmul.f32 %v1282_v29, %v1275_v37  ;;  %v1290_v43 = vmul.f32 %v1286_v32, %v1276_v40  ;;  %v1292_v44 = vpop.permute.xlu0 %1291  ;;  %2217 = vmatmul.mubr.msk.f32.vlgmr.msra.gmra.mxu0 %vm308_vm5, %v2214_v34  ;;  %2221 = vmatmul.mubr.msk.f32.vlgmr.msra.gmra.mxu1 %vm308_vm5, %v2218_v35 }
 0x2e2   :  { %1836 = vmatprep.mubr.f32.mxu0 %v2311_v2  ;;  %1919 = vmatprep.mubr.f32.mxu1 %v2311_v2 }
 0x2e3   :  { %v1294_v48 = vpop.permute.xlu1 %1293  ;;  %2223 = vmatprep.subr.msk.mxu0 %vm312_vm4, %v1290_v43 }
 0x2e4   :  { %v1295_v20 = vsel %vm243_vm10, %v1292_v44, %v1294_v48  ;;  %v1296_v49 = vsel %vm243_vm10, %v1294_v48, %v1292_v44  ;;  %2224 = vmatpush1.msk.msra.mxu0 %vm312_vm4, %v1289_v42 }
 0x2e5   :  { %v1309_v50 = vmul.f32 %v1302_v41, %v1295_v20  ;;  %v1310_v18 = vmul.f32 %v1306_v45, %v1296_v49  ;;  %v1312_v51 = vpop.permute.xlu0 %1311  ;;  %2225 = vmatmul.mubr.msk.f32.vlgmr.msra.gmra.mxu0 %vm308_vm5, %v2222_v47 }
 0x2e6   :  { %2002 = vmatprep.mubr.f32.mxu0 %v2311_v2 }
 0x2e7   :  { %v1314_v56 = vpop.permute.xlu1 %1313  ;;  %2227 = vmatprep.subr.msk.mxu1 %vm312_vm4, %v1310_v18 }
 0x2e8   :  { %v1315_v57 = vsel %vm265_vm7, %v1312_v51, %v1314_v56  ;;  %v1316_v58 = vsel %vm265_vm7, %v1314_v56, %v1312_v51  ;;  %2228 = vmatpush1.msk.msra.mxu1 %vm312_vm4, %v1309_v50 }
 0x2e9   :  { %v1329_v59 = vmul.f32 %v1322_v52, %v1315_v57  ;;  %v1330_v61 = vmul.f32 %v1326_v53, %v1316_v58  ;;  %2229 = vmatmul.mubr.msk.f32.vlgmr.msra.gmra.mxu1 %vm308_vm5, %v2226_v55  ;;  %v1332_v4 = vpop.permute.xlu0 %1331 }
 0x2ea   :  { %2085 = vmatprep.mubr.f32.mxu1 %v2311_v2  ;;  %v2234_v2 = vld [vmem:[%s2787_s3 + $0x20] sm:$0xf]  ;;  %s2321_s3 = smov [#allocation2]  }
 0x2eb   :  { %v1334_v5 = vpop.permute.xlu1 %1333  ;;  %2231 = vmatprep.subr.msk.mxu0 %vm312_vm4, %v1330_v61  ;;  %s2130_s2 = sshll.u32 %s2321_s3, 4  ;;  %s2131_s2 = int_to_ptr.vmem [resolvable:$true] %s2130_s2 }
 0x2ec   :  { %v1335_v7 = vsel %vm287_vm11, %v1332_v4, %v1334_v5  ;;  %v1336_v25 = vsel %vm287_vm11, %v1334_v5, %v1332_v4  ;;  %2232 = vmatpush1.msk.msra.mxu0 %vm312_vm4, %v1329_v59  ;;  %s2289_s14 = scalar_lea.vmem %s2131_s2, 256  ;;  %p2294_p1 = scmp.lt.s32.totalorder %s2131_s2, %s2131_s2 }
 0x2ed   :  { %v1349_v26 = vmul.f32 %v1342_v62, %v1335_v7  ;;  %v1350_v8 = vmul.f32 %v1346_v63, %v1336_v25  ;;  %2233 = vmatmul.mubr.msk.f32.vlgmr.msra.gmra.mxu0 %vm308_vm5, %v2230_v3  ;;  %p2290_p0 = scmp.ne.s32.totalorder %s2131_s2, %s2289_s14  ;;  %p2295_p2 = scmp.lt.s32.totalorder %s2289_s14, %s2289_s14 }
 0x2ef   :  { %2235 = vmatprep.subr.msk.mxu1 %vm312_vm4, %v1350_v8  ;;  %p2296_p3 = por %p2295_p2, %p2294_p1 }
 0x2f0   :  { %2236 = vmatpush1.msk.msra.mxu1 %vm312_vm4, %v1349_v26 }
 0x2f1   :  { %2237 = vmatmul.mubr.msk.f32.vlgmr.msra.gmra.mxu1 %vm308_vm5, %v2234_v2  ;;  %p2297_p4 = pnand %p2296_p3, %p2290_p0 }
 0x2f6   :  { %v1062_v13 = vpop.permute.xlu0 %1061 }
 0x2f7   :  { %v1064_v14 = vadd.f32 %v1062_v13, %v1056_v24  ;;  %v1065_v15 = vadd.f32 %v1062_v13, %v1057_v12 }
 0x2f8   :  { %v2098_v62 = vpop.permute.xlu1 %2097 }
 0x2f9   :  { %v2188_v16 = vmul.f32 -1.442695, %v1064_v14  ;;  %v2189_v17 = vmul.f32 -1.442695, %v1065_v15 }
 0x2fb   :  { %2273 = vpow2.f32 %v2188_v16 }
 0x2fc   :  { %2275 = vpow2.f32 %v2189_v17 }
 0x308   :  { %v2274_v19 = vpop.eup %2273 }
 0x309   :  { %v2276_v21 = vpop.eup %2275  ;;  %v1072_v22 = vadd.f32 1.0, %v2274_v19 }
 0x30a   :  { %v1073_v23 = vadd.f32 1.0, %v2276_v21 }
 0x30b   :  { %2277 = vrcp.f32 %v1072_v22 }
 0x30c   :  { %2279 = vrcp.f32 %v1073_v23 }
 0x318   :  { %v2278_v27 = vpop.eup %2277 }
 0x319   :  { %v2280_v28 = vpop.eup %2279  ;;  %v1078_v29 = vmul.f32 %v2278_v27, %v1064_v14 }
 0x31a   :  { %v1079_v11 = vmul.f32 %v2280_v28, %v1065_v15 }
 0x31b   :  { %v1081_v38 = vadd.f32 %v1078_v29, %v2362_v0 }
 0x31c   :  { %v1082_v39 = vadd.f32 %v1079_v11, %v2366_v1 }
 0x31e   :  { %v1085_v30 = vcombine.low %v1081_v38, %v1082_v39 }
 0x320   :  { %1087 = vst [vmem:[#allocation2] sm:$0xff] %v1085_v30 }
 0x395   :  { %v1428_v31 = vpop.f32.mrf.mxu1 }
 0x397   :  { %v1430_v32 = vpop.f32.mrf.mxu1 }
 0x399   :  { %v1508_v33 = vpop.f32.mrf.mxu0 }
 0x39a   :  { %v1509_v34 = vadd.f32 %v1508_v33, %v1428_v31 }
 0x39b   :  { %v1510_v35 = vpop.f32.mrf.mxu0 }
 0x39c   :  { %v1511_v36 = vadd.f32 %v1510_v35, %v1430_v32 }
 0x39d   :  { %v1589_v37 = vpop.f32.mrf.mxu1 }
 0x39e   :  { %v1594_v40 = vadd.f32 %v1589_v37, %v1509_v34 }
 0x39f   :  { %v1591_v41 = vpop.f32.mrf.mxu1 }
 0x3a0   :  { %v1595_v42 = vadd.f32 %v1591_v41, %v1511_v36 }
 0x3a1   :  { %v1672_v43 = vpop.f32.mrf.mxu0  ;;  %v1755_v44 = vpop.f32.mrf.mxu1 }
 0x3a2   :  { %v1677_v45 = vadd.f32 %v1672_v43, %v1594_v40 }
 0x3a3   :  { %v1674_v46 = vpop.f32.mrf.mxu0  ;;  %v1757_v48 = vpop.f32.mrf.mxu1 }
 0x3a4   :  { %v1678_v47 = vadd.f32 %v1674_v46, %v1595_v42  ;;  %v1760_v0 = vadd.f32 %v1755_v44, %v1677_v45 }
 0x3a5   :  { %v1838_v1 = vpop.f32.mrf.mxu0 }
 0x3a6   :  { %v1761_v20 = vadd.f32 %v1757_v48, %v1678_v47  ;;  %v1843_v49 = vadd.f32 %v1838_v1, %v1760_v0 }
 0x3a7   :  { %v1840_v50 = vpop.f32.mrf.mxu0 }
 0x3a8   :  { %v1844_v51 = vadd.f32 %v1840_v50, %v1761_v20 }
 0x3a9   :  { %v1921_v18 = vpop.f32.mrf.mxu1 }
 0x3aa   :  { %v1926_v52 = vadd.f32 %v1921_v18, %v1843_v49 }
 0x3ab   :  { %v1923_v53 = vpop.f32.mrf.mxu1 }
 0x3ac   :  { %v1927_v56 = vadd.f32 %v1923_v53, %v1844_v51 }
 0x3ad   :  { %v2004_v54 = vpop.f32.mrf.mxu0 }
 0x3ae   :  { %v2009_v57 = vadd.f32 %v2004_v54, %v1926_v52 }
 0x3af   :  { %v2006_v55 = vpop.f32.mrf.mxu0 }
 0x3b0   :  { %v2010_v59 = vadd.f32 %v2006_v55, %v1927_v56 }
 0x3b1   :  { %v2087_v58 = vpop.f32.mrf.mxu1 }
 0x3b2   :  { %v2092_v61 = vadd.f32 %v2087_v58, %v2009_v57 }
 0x3b3   :  { %v2089_v63 = vpop.f32.mrf.mxu1 }
 0x3b4   :  { %v2100_v3 = vadd.f32 %v2098_v62, %v2092_v61  ;;  %v2093_v4 = vadd.f32 %v2089_v63, %v2010_v59 }
 0x3b6   :  { %v2238_v5 = vmul.f32 -1.442695, %v2100_v3  ;;  %v2101_v7 = vadd.f32 %v2098_v62, %v2093_v4 }
 0x3b8   :  { %2281 = vpow2.f32 %v2238_v5  ;;  %v2239_v25 = vmul.f32 -1.442695, %v2101_v7 }
 0x3ba   :  { %2283 = vpow2.f32 %v2239_v25 }
 0x3c5   :  { %v2282_v26 = vpop.eup %2281 }
 0x3c6   :  { %v2108_v8 = vadd.f32 1.0, %v2282_v26 }
 0x3c7   :  { %v2284_v9 = vpop.eup %2283 }
 0x3c8   :  { %2285 = vrcp.f32 %v2108_v8  ;;  %v2109_v2 = vadd.f32 1.0, %v2284_v9 }
 0x3ca   :  { %2287 = vrcp.f32 %v2109_v2 }
 0x3d5   :  { %v2286_v10 = vpop.eup %2285 }
 0x3d6   :  { %v2114_v24 = vmul.f32 %v2286_v10, %v2100_v3 }
 0x3d7   :  { %v2288_v12 = vpop.eup %2287 }
 0x3d8   :  { %v2115_v13 = vmul.f32 %v2288_v12, %v2101_v7  ;;  %v2117_v14 = vadd.f32 %v2483_v60, %v2114_v24 }
 0x3da   :  { %v2118_v15 = vadd.f32 %v2115_v13, %v2494_v6 }
 0x3dc   :  { %v2121_v16 = vcombine.low %v2117_v14, %v2118_v15 }
 0x3de   :  { %2124 = vst [vmem:[#allocation2 + $0x8] sm:$0xff] %v2121_v16 }
 0x3df   :  { %2300 = shalt.err (!%p2297_p4)
}
 0x3e0   :  { %s2322_s15 = smov 128   ;;  %s2323_s16 = smov 8  }
 0x3e1   :  { %2136 = dma.vmem_to_hbm [thread:$0]  %s2131_s2, 256, %s2790_s6, [#allocation3], %s2322_s15, %s2322_s15, %s2323_s16  }
 0x3e2   :  { %2309 = dma.done.wait [#allocation3], 256  }
 0x3e3   :  { %2310 = vsyncadd [#allocation3], 4294967040 }
 0x3e4   :  { %2140 = vsyncpa [#allocation3], 1 }

</bundles_post_ra>
